<compile_context>
chip_gen: v6e
topology: v6e:2x2x1
jax: 0.10.0
libtpu: 0.0.40
codegen_flags: <defaults>
</compile_context>

<pallas_src>
import jax
import jax.numpy as jnp
from jax import lax
from jax.experimental import pallas as pl
from jax.experimental.pallas import tpu as pltpu


# -----------------------------------------------------------------------------
# Helpers: padding / per-generation tile sizing
# -----------------------------------------------------------------------------
def _round_up(x, m):
    return ((x + m - 1) // m) * m


def _vmem_budget_bytes():
    """Scoped-VMEM budget for this kernel, derived from the chip's capacity."""
    cap = 64 * 1024 * 1024
    try:
        info = pltpu.get_tpu_info()
        cap = int(getattr(info, "vmem_capacity_bytes", cap)) or cap
    except Exception:
        pass
    # Use at most half the physical VMEM (v7x: 64 MiB -> 32 MiB scoped;
    # v5e/v6e: 128 MiB -> 64 MiB scoped), never above 96 MiB.
    return min(cap // 2, 96 * 1024 * 1024)


def _choose_m_tile(B, Ci, Co, M):
    """Largest lane-dense M tile whose double-buffered operands fit the budget."""
    budget = _vmem_budget_bytes()
    # f32 real+imag tiles for x (Ci*B), w (Ci*Co), out (B*Co), double-buffered.
    bytes_per_lane = 4 * 2 * (Ci * B + Ci * Co + B * Co) * 2
    cap = max(128, (int(budget * 0.75) // bytes_per_lane) // 128 * 128)
    return min(cap, 2048, _round_up(M, 128))


# -----------------------------------------------------------------------------
# Pallas kernel: complex per-mode channel mixing.
#
#   out[b, o, m] = sum_i  x[b, i, m] * w[i, o, m]     (complex)
#
# Grid axis 0: the 4 frequency-corner blocks; grid axis 1: M tiles.
# Refs (corner axis squeezed):
#   xr/xi : (Ci, B, Mt)     wr/wi : (Ci, Co, Mt)     outr/outi : (B, Co, Mt)
# -----------------------------------------------------------------------------
def _spectral_mul_kernel(xr_ref, xi_ref, wr_ref, wi_ref, outr_ref, outi_ref):
    ci, b, mt = xr_ref.shape
    co = wr_ref.shape[1]

    def body(i, carry):
        acc_r, acc_i = carry
        xr = xr_ref[i]                      # (B, Mt)   per-channel load
        xi = xi_ref[i]
        wr = wr_ref[i]                      # (Co, Mt)
        wi = wi_ref[i]
        # Karatsuba sums computed before broadcasting (cheap: B*Mt / Co*Mt).
        xs = xr + xi
        ws = wr + wi
        t = xr[:, None, :] * wr[None, :, :]     # (B, Co, Mt)
        u = xi[:, None, :] * wi[None, :, :]
        s = xs[:, None, :] * ws[None, :, :]
        acc_r = acc_r + (t - u)
        acc_i = acc_i + (s - t - u)
        return acc_r, acc_i

    zero = jnp.zeros((b, co, mt), jnp.float32)
    acc_r, acc_i = lax.fori_loop(0, ci, body, (zero, zero), unroll=True)

    # Single unmasked store per output per tile (lane-dense Mt).
    outr_ref[...] = acc_r
    outi_ref[...] = acc_i


def _spectral_mul(xr, xi, wr, wi, m_tile):
    """xr/xi: (4, Ci, B, Mp) f32; wr/wi: (4, Ci, Co, Mp) f32.
    Returns (outr, outi): (4, B, Co, Mp) f32."""
    four, Ci, B, Mp = xr.shape
    Co = wr.shape[2]
    n_m = Mp // m_tile

    x_spec = pl.BlockSpec((pl.Squeezed(), Ci, B, m_tile), lambda c, m: (c, 0, 0, m))
    w_spec = pl.BlockSpec((pl.Squeezed(), Ci, Co, m_tile), lambda c, m: (c, 0, 0, m))
    o_spec = pl.BlockSpec((pl.Squeezed(), B, Co, m_tile), lambda c, m: (c, 0, 0, m))

    flops = 8 * four * B * Ci * Co * Mp
    bytes_accessed = 4 * 2 * four * Mp * (Ci * B + Ci * Co + B * Co)

    outr, outi = pl.pallas_call(
        _spectral_mul_kernel,
        out_shape=(
            jax.ShapeDtypeStruct((four, B, Co, Mp), jnp.float32),
            jax.ShapeDtypeStruct((four, B, Co, Mp), jnp.float32),
        ),
        grid_spec=pltpu.PrefetchScalarGridSpec(
            num_scalar_prefetch=0,
            grid=(four, n_m),
            in_specs=[x_spec, x_spec, w_spec, w_spec],
            out_specs=[o_spec, o_spec],
        ),
        compiler_params=pltpu.CompilerParams(
            dimension_semantics=("parallel", "parallel"),
            vmem_limit_bytes=_vmem_budget_bytes(),
        ),
        cost_estimate=pl.CostEstimate(
            flops=flops, transcendentals=0, bytes_accessed=bytes_accessed),
    )(xr, xi, wr, wi)
    return outr, outi


# -----------------------------------------------------------------------------
# SpectralConv3d module (JAX version)
# -----------------------------------------------------------------------------
class SpectralConv3d:
    def __init__(self, in_channels, out_channels, modes1, modes2, modes3, key):
        self.in_channels = in_channels
        self.out_channels = out_channels
        self.modes1 = modes1
        self.modes2 = modes2
        self.modes3 = modes3
        scale = 1.0 / (in_channels * out_channels)

        shape = (in_channels, out_channels, modes1, modes2, modes3)
        keys = jax.random.split(key, 8)

        def cplx_rand(kr, ki):
            # mirrors torch.rand(..., dtype=torch.cfloat): real & imag ~ U[0,1)
            return (jax.random.uniform(kr, shape, dtype=jnp.float32)
                    + 1j * jax.random.uniform(ki, shape, dtype=jnp.float32)
                    ).astype(jnp.complex64) * scale

        self.weights1 = cplx_rand(keys[0], keys[1])
        self.weights2 = cplx_rand(keys[2], keys[3])
        self.weights3 = cplx_rand(keys[4], keys[5])
        self.weights4 = cplx_rand(keys[6], keys[7])

        # Pre-split real/imag, mode-flattened kernel-layout weights (constant,
        # avoids per-call complex split / stacking HBM traffic).
        M = modes1 * modes2 * modes3
        w_stack = jnp.stack(
            [self.weights1, self.weights2, self.weights3, self.weights4],
            axis=0).reshape(4, in_channels, out_channels, M)
        self._wr = jnp.real(w_stack).astype(jnp.float32)
        self._wi = jnp.imag(w_stack).astype(jnp.float32)

    def __call__(self, x):
        B = x.shape[0]
        D1, D2, D3 = x.shape[-3], x.shape[-2], x.shape[-1]
        m1, m2, m3 = self.modes1, self.modes2, self.modes3
        Ci, Co = self.in_channels, self.out_channels
        M = m1 * m2 * m3

        m_tile = _choose_m_tile(B, Ci, Co, M)
        Mp = _round_up(M, m_tile)
        pad_m = Mp - M

        # TODO(synk): rfftn / irfftn have no Pallas primitive; computed with jnp.fft.
        x_ft = jnp.fft.rfftn(x, axes=(-3, -2, -1))      # (B, Ci, D1, D2, D3//2+1)

        # Split real/imag once, then gather the 4 corner blocks, flatten the
        # mode axes into one (padded, lane-dense) axis, Ci leading for the
        # in-kernel channel accumulation loop.
        def gather_corners(a):
            blk = jnp.stack([a[:, :, :m1, :m2, :m3],
                             a[:, :, -m1:, :m2, :m3],
                             a[:, :, :m1, -m2:, :m3],
                             a[:, :, -m1:, -m2:, :m3]], axis=0)
            blk = blk.reshape(4, B, Ci, M)
            blk = jnp.transpose(blk, (0, 2, 1, 3))       # (4, Ci, B, M)
            return jnp.pad(blk, ((0, 0), (0, 0), (0, 0), (0, pad_m)))

        xr = gather_corners(jnp.real(x_ft).astype(jnp.float32))
        xi = gather_corners(jnp.imag(x_ft).astype(jnp.float32))
        wr = jnp.pad(self._wr, ((0, 0), (0, 0), (0, 0), (0, pad_m)))
        wi = jnp.pad(self._wi, ((0, 0), (0, 0), (0, 0), (0, pad_m)))

        # Hot path in Pallas: complex per-mode channel mixing.
        outr, outi = _spectral_mul(xr, xi, wr, wi, m_tile)    # (4, B, Co, Mp)
        out_blocks = (outr[..., :M] + 1j * outi[..., :M]).astype(jnp.complex64)
        out_blocks = out_blocks.reshape(4, B, Co, m1, m2, m3)

        # Scatter into the (mostly zero) spectral output tensor.
        out_ft = jnp.zeros((B, Co, D1, D2, D3 // 2 + 1), dtype=jnp.complex64)
        out_ft = out_ft.at[:, :, :m1, :m2, :m3].set(out_blocks[0])
        out_ft = out_ft.at[:, :, -m1:, :m2, :m3].set(out_blocks[1])
        out_ft = out_ft.at[:, :, :m1, -m2:, :m3].set(out_blocks[2])
        out_ft = out_ft.at[:, :, -m1:, -m2:, :m3].set(out_blocks[3])

        # Inverse FFT back to real space.
        y = jnp.fft.irfftn(out_ft, s=(D1, D2, D3), axes=(-3, -2, -1))
        return y.astype(jnp.float32)


# -----------------------------------------------------------------------------
# Pure-JAX reference (same math, no Pallas) for a sanity check.
# -----------------------------------------------------------------------------
def _reference(module, x):
    B = x.shape[0]
    D1, D2, D3 = x.shape[-3:]
    m1, m2, m3 = module.modes1, module.modes2, module.modes3
    x_ft = jnp.fft.rfftn(x, axes=(-3, -2, -1))

    def mul(inp, w):
        return jnp.einsum('bixyz,ioxyz->boxyz', inp, w)

    out_ft = jnp.zeros((B, module.out_channels, D1, D2, D3 // 2 + 1),
                       dtype=jnp.complex64)
    out_ft = out_ft.at[:, :, :m1, :m2, :m3].set(
        mul(x_ft[:, :, :m1, :m2, :m3], module.weights1))
    out_ft = out_ft.at[:, :, -m1:, :m2, :m3].set(
        mul(x_ft[:, :, -m1:, :m2, :m3], module.weights2))
    out_ft = out_ft.at[:, :, :m1, -m2:, :m3].set(
        mul(x_ft[:, :, :m1, -m2:, :m3], module.weights3))
    out_ft = out_ft.at[:, :, -m1:, -m2:, :m3].set(
        mul(x_ft[:, :, -m1:, -m2:, :m3], module.weights4))
    return jnp.fft.irfftn(out_ft, s=(D1, D2, D3), axes=(-3, -2, -1))


if __name__ == "__main__":
    key = jax.random.PRNGKey(0)
    k_x, k_w = jax.random.split(key)

    B, Ci, Co = 2, 4, 4
    D1, D2, D3 = 8, 8, 8
    m1, m2, m3 = 3, 3, 3

    x = jax.random.normal(k_x, (B, Ci, D1, D2, D3), dtype=jnp.float32)

    module = SpectralConv3d(Ci, Co, m1, m2, m3, k_w)

    y = module(x)
    y = jax.block_until_ready(y)

    y_ref = jax.block_until_ready(_reference(module, x))
    assert y.shape == (B, Co, D1, D2, D3)
    assert jnp.max(jnp.abs(y - y_ref)) < 1e-4

    print("KERNEL_OK")
</pallas_src>

<mosaic_0001>
module attributes {stable_mosaic.version = 11 : i64} {
  func.func @_spectral_mul_kernel(%arg0: i32, %arg1: i32, %arg2: memref<1x4x2x128xf32, #tpu.memory_space<vmem>>, %arg3: memref<1x4x2x128xf32, #tpu.memory_space<vmem>>, %arg4: memref<1x4x4x128xf32, #tpu.memory_space<vmem>>, %arg5: memref<1x4x4x128xf32, #tpu.memory_space<vmem>>, %arg6: memref<1x2x4x128xf32, #tpu.memory_space<vmem>>, %arg7: memref<1x2x4x128xf32, #tpu.memory_space<vmem>>) attributes {dimension_semantics = [#tpu.dimension_semantics<parallel>, #tpu.dimension_semantics<parallel>], iteration_bounds = array<i64: 4, 1>, scalar_prefetch = 0 : i64, scratch_operands = 0 : i64, tpu.core_type = #tpu.core_type<tc>, window_params = [{transform_indices = @transform_0, window_bounds = array<i64: 1, 4, 2, 128>}, {transform_indices = @transform_1, window_bounds = array<i64: 1, 4, 2, 128>}, {transform_indices = @transform_2, window_bounds = array<i64: 1, 4, 4, 128>}, {transform_indices = @transform_3, window_bounds = array<i64: 1, 4, 4, 128>}, {transform_indices = @transform_4, window_bounds = array<i64: 1, 2, 4, 128>}, {transform_indices = @transform_5, window_bounds = array<i64: 1, 2, 4, 128>}]} {
    %cst = arith.constant 0.000000e+00 : f32
    %0 = vector.broadcast %cst : f32 to vector<2x4x128xf32>
    %c0_i32 = arith.constant 0 : i32
    %c0 = arith.constant 0 : index
    %1 = arith.index_cast %c0_i32 : i32 to index
    %c0_0 = arith.constant 0 : index
    %c0_1 = arith.constant 0 : index
    %2 = vector.load %arg2[%c0, %1, %c0_0, %c0_1] : memref<1x4x2x128xf32, #tpu.memory_space<vmem>>, vector<1x1x2x128xf32>
    %3 = vector.shape_cast %2 : vector<1x1x2x128xf32> to vector<2x128xf32>
    %c0_2 = arith.constant 0 : index
    %4 = arith.index_cast %c0_i32 : i32 to index
    %c0_3 = arith.constant 0 : index
    %c0_4 = arith.constant 0 : index
    %5 = vector.load %arg3[%c0_2, %4, %c0_3, %c0_4] : memref<1x4x2x128xf32, #tpu.memory_space<vmem>>, vector<1x1x2x128xf32>
    %6 = vector.shape_cast %5 : vector<1x1x2x128xf32> to vector<2x128xf32>
    %c0_5 = arith.constant 0 : index
    %7 = arith.index_cast %c0_i32 : i32 to index
    %c0_6 = arith.constant 0 : index
    %c0_7 = arith.constant 0 : index
    %8 = vector.load %arg4[%c0_5, %7, %c0_6, %c0_7] : memref<1x4x4x128xf32, #tpu.memory_space<vmem>>, vector<1x1x4x128xf32>
    %9 = vector.shape_cast %8 : vector<1x1x4x128xf32> to vector<4x128xf32>
    %c0_8 = arith.constant 0 : index
    %10 = arith.index_cast %c0_i32 : i32 to index
    %c0_9 = arith.constant 0 : index
    %c0_10 = arith.constant 0 : index
    %11 = vector.load %arg5[%c0_8, %10, %c0_9, %c0_10] : memref<1x4x4x128xf32, #tpu.memory_space<vmem>>, vector<1x1x4x128xf32>
    %12 = vector.shape_cast %11 : vector<1x1x4x128xf32> to vector<4x128xf32>
    %13 = arith.addf %3, %6 : vector<2x128xf32>
    %14 = arith.addf %9, %12 : vector<4x128xf32>
    %15 = vector.shape_cast %3 : vector<2x128xf32> to vector<2x1x128xf32>
    %16 = vector.shape_cast %9 : vector<4x128xf32> to vector<1x4x128xf32>
    %17 = vector.broadcast %15 : vector<2x1x128xf32> to vector<2x4x128xf32>
    %18 = vector.broadcast %16 : vector<1x4x128xf32> to vector<2x4x128xf32>
    %19 = arith.mulf %17, %18 : vector<2x4x128xf32>
    %20 = vector.shape_cast %6 : vector<2x128xf32> to vector<2x1x128xf32>
    %21 = vector.shape_cast %12 : vector<4x128xf32> to vector<1x4x128xf32>
    %22 = vector.broadcast %20 : vector<2x1x128xf32> to vector<2x4x128xf32>
    %23 = vector.broadcast %21 : vector<1x4x128xf32> to vector<2x4x128xf32>
    %24 = arith.mulf %22, %23 : vector<2x4x128xf32>
    %25 = vector.shape_cast %13 : vector<2x128xf32> to vector<2x1x128xf32>
    %26 = vector.shape_cast %14 : vector<4x128xf32> to vector<1x4x128xf32>
    %27 = vector.broadcast %25 : vector<2x1x128xf32> to vector<2x4x128xf32>
    %28 = vector.broadcast %26 : vector<1x4x128xf32> to vector<2x4x128xf32>
    %29 = arith.mulf %27, %28 : vector<2x4x128xf32>
    %30 = arith.subf %19, %24 : vector<2x4x128xf32>
    %31 = arith.addf %0, %30 : vector<2x4x128xf32>
    %32 = arith.subf %29, %19 : vector<2x4x128xf32>
    %33 = arith.subf %32, %24 : vector<2x4x128xf32>
    %34 = arith.addf %0, %33 : vector<2x4x128xf32>
    %c1_i32 = arith.constant 1 : i32
    %c0_11 = arith.constant 0 : index
    %35 = arith.index_cast %c1_i32 : i32 to index
    %c0_12 = arith.constant 0 : index
    %c0_13 = arith.constant 0 : index
    %36 = vector.load %arg2[%c0_11, %35, %c0_12, %c0_13] : memref<1x4x2x128xf32, #tpu.memory_space<vmem>>, vector<1x1x2x128xf32>
    %37 = vector.shape_cast %36 : vector<1x1x2x128xf32> to vector<2x128xf32>
    %c0_14 = arith.constant 0 : index
    %38 = arith.index_cast %c1_i32 : i32 to index
    %c0_15 = arith.constant 0 : index
    %c0_16 = arith.constant 0 : index
    %39 = vector.load %arg3[%c0_14, %38, %c0_15, %c0_16] : memref<1x4x2x128xf32, #tpu.memory_space<vmem>>, vector<1x1x2x128xf32>
    %40 = vector.shape_cast %39 : vector<1x1x2x128xf32> to vector<2x128xf32>
    %c0_17 = arith.constant 0 : index
    %41 = arith.index_cast %c1_i32 : i32 to index
    %c0_18 = arith.constant 0 : index
    %c0_19 = arith.constant 0 : index
    %42 = vector.load %arg4[%c0_17, %41, %c0_18, %c0_19] : memref<1x4x4x128xf32, #tpu.memory_space<vmem>>, vector<1x1x4x128xf32>
    %43 = vector.shape_cast %42 : vector<1x1x4x128xf32> to vector<4x128xf32>
    %c0_20 = arith.constant 0 : index
    %44 = arith.index_cast %c1_i32 : i32 to index
    %c0_21 = arith.constant 0 : index
    %c0_22 = arith.constant 0 : index
    %45 = vector.load %arg5[%c0_20, %44, %c0_21, %c0_22] : memref<1x4x4x128xf32, #tpu.memory_space<vmem>>, vector<1x1x4x128xf32>
    %46 = vector.shape_cast %45 : vector<1x1x4x128xf32> to vector<4x128xf32>
    %47 = arith.addf %37, %40 : vector<2x128xf32>
    %48 = arith.addf %43, %46 : vector<4x128xf32>
    %49 = vector.shape_cast %37 : vector<2x128xf32> to vector<2x1x128xf32>
    %50 = vector.shape_cast %43 : vector<4x128xf32> to vector<1x4x128xf32>
    %51 = vector.broadcast %49 : vector<2x1x128xf32> to vector<2x4x128xf32>
    %52 = vector.broadcast %50 : vector<1x4x128xf32> to vector<2x4x128xf32>
    %53 = arith.mulf %51, %52 : vector<2x4x128xf32>
    %54 = vector.shape_cast %40 : vector<2x128xf32> to vector<2x1x128xf32>
    %55 = vector.shape_cast %46 : vector<4x128xf32> to vector<1x4x128xf32>
    %56 = vector.broadcast %54 : vector<2x1x128xf32> to vector<2x4x128xf32>
    %57 = vector.broadcast %55 : vector<1x4x128xf32> to vector<2x4x128xf32>
    %58 = arith.mulf %56, %57 : vector<2x4x128xf32>
    %59 = vector.shape_cast %47 : vector<2x128xf32> to vector<2x1x128xf32>
    %60 = vector.shape_cast %48 : vector<4x128xf32> to vector<1x4x128xf32>
    %61 = vector.broadcast %59 : vector<2x1x128xf32> to vector<2x4x128xf32>
    %62 = vector.broadcast %60 : vector<1x4x128xf32> to vector<2x4x128xf32>
    %63 = arith.mulf %61, %62 : vector<2x4x128xf32>
    %64 = arith.subf %53, %58 : vector<2x4x128xf32>
    %65 = arith.addf %31, %64 : vector<2x4x128xf32>
    %66 = arith.subf %63, %53 : vector<2x4x128xf32>
    %67 = arith.subf %66, %58 : vector<2x4x128xf32>
    %68 = arith.addf %34, %67 : vector<2x4x128xf32>
    %c2_i32 = arith.constant 2 : i32
    %c0_23 = arith.constant 0 : index
    %69 = arith.index_cast %c2_i32 : i32 to index
    %c0_24 = arith.constant 0 : index
    %c0_25 = arith.constant 0 : index
    %70 = vector.load %arg2[%c0_23, %69, %c0_24, %c0_25] : memref<1x4x2x128xf32, #tpu.memory_space<vmem>>, vector<1x1x2x128xf32>
    %71 = vector.shape_cast %70 : vector<1x1x2x128xf32> to vector<2x128xf32>
    %c0_26 = arith.constant 0 : index
    %72 = arith.index_cast %c2_i32 : i32 to index
    %c0_27 = arith.constant 0 : index
    %c0_28 = arith.constant 0 : index
    %73 = vector.load %arg3[%c0_26, %72, %c0_27, %c0_28] : memref<1x4x2x128xf32, #tpu.memory_space<vmem>>, vector<1x1x2x128xf32>
    %74 = vector.shape_cast %73 : vector<1x1x2x128xf32> to vector<2x128xf32>
    %c0_29 = arith.constant 0 : index
    %75 = arith.index_cast %c2_i32 : i32 to index
    %c0_30 = arith.constant 0 : index
    %c0_31 = arith.constant 0 : index
    %76 = vector.load %arg4[%c0_29, %75, %c0_30, %c0_31] : memref<1x4x4x128xf32, #tpu.memory_space<vmem>>, vector<1x1x4x128xf32>
    %77 = vector.shape_cast %76 : vector<1x1x4x128xf32> to vector<4x128xf32>
    %c0_32 = arith.constant 0 : index
    %78 = arith.index_cast %c2_i32 : i32 to index
    %c0_33 = arith.constant 0 : index
    %c0_34 = arith.constant 0 : index
    %79 = vector.load %arg5[%c0_32, %78, %c0_33, %c0_34] : memref<1x4x4x128xf32, #tpu.memory_space<vmem>>, vector<1x1x4x128xf32>
    %80 = vector.shape_cast %79 : vector<1x1x4x128xf32> to vector<4x128xf32>
    %81 = arith.addf %71, %74 : vector<2x128xf32>
    %82 = arith.addf %77, %80 : vector<4x128xf32>
    %83 = vector.shape_cast %71 : vector<2x128xf32> to vector<2x1x128xf32>
    %84 = vector.shape_cast %77 : vector<4x128xf32> to vector<1x4x128xf32>
    %85 = vector.broadcast %83 : vector<2x1x128xf32> to vector<2x4x128xf32>
    %86 = vector.broadcast %84 : vector<1x4x128xf32> to vector<2x4x128xf32>
    %87 = arith.mulf %85, %86 : vector<2x4x128xf32>
    %88 = vector.shape_cast %74 : vector<2x128xf32> to vector<2x1x128xf32>
    %89 = vector.shape_cast %80 : vector<4x128xf32> to vector<1x4x128xf32>
    %90 = vector.broadcast %88 : vector<2x1x128xf32> to vector<2x4x128xf32>
    %91 = vector.broadcast %89 : vector<1x4x128xf32> to vector<2x4x128xf32>
    %92 = arith.mulf %90, %91 : vector<2x4x128xf32>
    %93 = vector.shape_cast %81 : vector<2x128xf32> to vector<2x1x128xf32>
    %94 = vector.shape_cast %82 : vector<4x128xf32> to vector<1x4x128xf32>
    %95 = vector.broadcast %93 : vector<2x1x128xf32> to vector<2x4x128xf32>
    %96 = vector.broadcast %94 : vector<1x4x128xf32> to vector<2x4x128xf32>
    %97 = arith.mulf %95, %96 : vector<2x4x128xf32>
    %98 = arith.subf %87, %92 : vector<2x4x128xf32>
    %99 = arith.addf %65, %98 : vector<2x4x128xf32>
    %100 = arith.subf %97, %87 : vector<2x4x128xf32>
    %101 = arith.subf %100, %92 : vector<2x4x128xf32>
    %102 = arith.addf %68, %101 : vector<2x4x128xf32>
    %c3_i32 = arith.constant 3 : i32
    %c0_35 = arith.constant 0 : index
    %103 = arith.index_cast %c3_i32 : i32 to index
    %c0_36 = arith.constant 0 : index
    %c0_37 = arith.constant 0 : index
    %104 = vector.load %arg2[%c0_35, %103, %c0_36, %c0_37] : memref<1x4x2x128xf32, #tpu.memory_space<vmem>>, vector<1x1x2x128xf32>
    %105 = vector.shape_cast %104 : vector<1x1x2x128xf32> to vector<2x128xf32>
    %c0_38 = arith.constant 0 : index
    %106 = arith.index_cast %c3_i32 : i32 to index
    %c0_39 = arith.constant 0 : index
    %c0_40 = arith.constant 0 : index
    %107 = vector.load %arg3[%c0_38, %106, %c0_39, %c0_40] : memref<1x4x2x128xf32, #tpu.memory_space<vmem>>, vector<1x1x2x128xf32>
    %108 = vector.shape_cast %107 : vector<1x1x2x128xf32> to vector<2x128xf32>
    %c0_41 = arith.constant 0 : index
    %109 = arith.index_cast %c3_i32 : i32 to index
    %c0_42 = arith.constant 0 : index
    %c0_43 = arith.constant 0 : index
    %110 = vector.load %arg4[%c0_41, %109, %c0_42, %c0_43] : memref<1x4x4x128xf32, #tpu.memory_space<vmem>>, vector<1x1x4x128xf32>
    %111 = vector.shape_cast %110 : vector<1x1x4x128xf32> to vector<4x128xf32>
    %c0_44 = arith.constant 0 : index
    %112 = arith.index_cast %c3_i32 : i32 to index
    %c0_45 = arith.constant 0 : index
    %c0_46 = arith.constant 0 : index
    %113 = vector.load %arg5[%c0_44, %112, %c0_45, %c0_46] : memref<1x4x4x128xf32, #tpu.memory_space<vmem>>, vector<1x1x4x128xf32>
    %114 = vector.shape_cast %113 : vector<1x1x4x128xf32> to vector<4x128xf32>
    %115 = arith.addf %105, %108 : vector<2x128xf32>
    %116 = arith.addf %111, %114 : vector<4x128xf32>
    %117 = vector.shape_cast %105 : vector<2x128xf32> to vector<2x1x128xf32>
    %118 = vector.shape_cast %111 : vector<4x128xf32> to vector<1x4x128xf32>
    %119 = vector.broadcast %117 : vector<2x1x128xf32> to vector<2x4x128xf32>
    %120 = vector.broadcast %118 : vector<1x4x128xf32> to vector<2x4x128xf32>
    %121 = arith.mulf %119, %120 : vector<2x4x128xf32>
    %122 = vector.shape_cast %108 : vector<2x128xf32> to vector<2x1x128xf32>
    %123 = vector.shape_cast %114 : vector<4x128xf32> to vector<1x4x128xf32>
    %124 = vector.broadcast %122 : vector<2x1x128xf32> to vector<2x4x128xf32>
    %125 = vector.broadcast %123 : vector<1x4x128xf32> to vector<2x4x128xf32>
    %126 = arith.mulf %124, %125 : vector<2x4x128xf32>
    %127 = vector.shape_cast %115 : vector<2x128xf32> to vector<2x1x128xf32>
    %128 = vector.shape_cast %116 : vector<4x128xf32> to vector<1x4x128xf32>
    %129 = vector.broadcast %127 : vector<2x1x128xf32> to vector<2x4x128xf32>
    %130 = vector.broadcast %128 : vector<1x4x128xf32> to vector<2x4x128xf32>
    %131 = arith.mulf %129, %130 : vector<2x4x128xf32>
    %132 = arith.subf %121, %126 : vector<2x4x128xf32>
    %133 = arith.addf %99, %132 : vector<2x4x128xf32>
    %134 = arith.subf %131, %121 : vector<2x4x128xf32>
    %135 = arith.subf %134, %126 : vector<2x4x128xf32>
    %136 = arith.addf %102, %135 : vector<2x4x128xf32>
    %c4_i32 = arith.constant 4 : i32
    %c0_47 = arith.constant 0 : index
    %c0_48 = arith.constant 0 : index
    %c0_49 = arith.constant 0 : index
    %c0_50 = arith.constant 0 : index
    %137 = vector.load %arg6[%c0_47, %c0_48, %c0_49, %c0_50] : memref<1x2x4x128xf32, #tpu.memory_space<vmem>>, vector<1x2x4x128xf32>
    %138 = vector.shape_cast %137 : vector<1x2x4x128xf32> to vector<2x4x128xf32>
    %139 = vector.shape_cast %133 : vector<2x4x128xf32> to vector<1x2x4x128xf32>
    tpu.vector_store %arg6[%c0_47, %c0_48, %c0_49, %c0_50], %139 {strides = array<i32>} : memref<1x2x4x128xf32, #tpu.memory_space<vmem>>, vector<1x2x4x128xf32>,
    %c0_51 = arith.constant 0 : index
    %c0_52 = arith.constant 0 : index
    %c0_53 = arith.constant 0 : index
    %c0_54 = arith.constant 0 : index
    %140 = vector.load %arg7[%c0_51, %c0_52, %c0_53, %c0_54] : memref<1x2x4x128xf32, #tpu.memory_space<vmem>>, vector<1x2x4x128xf32>
    %141 = vector.shape_cast %140 : vector<1x2x4x128xf32> to vector<2x4x128xf32>
    %142 = vector.shape_cast %136 : vector<2x4x128xf32> to vector<1x2x4x128xf32>
    tpu.vector_store %arg7[%c0_51, %c0_52, %c0_53, %c0_54], %142 {strides = array<i32>} : memref<1x2x4x128xf32, #tpu.memory_space<vmem>>, vector<1x2x4x128xf32>,
    return
  }
  func.func @transform_0(%arg0: i32, %arg1: i32) -> (i32, i32, i32, i32) {
    %c0_i32 = arith.constant 0 : i32
    %c0_i32_0 = arith.constant 0 : i32
    %c0_i32_1 = arith.constant 0 : i32
    return %arg0, %c0_i32, %c0_i32_0, %arg1 : i32, i32, i32, i32
  }
  func.func @transform_1(%arg0: i32, %arg1: i32) -> (i32, i32, i32, i32) {
    %c0_i32 = arith.constant 0 : i32
    %c0_i32_0 = arith.constant 0 : i32
    %c0_i32_1 = arith.constant 0 : i32
    return %arg0, %c0_i32, %c0_i32_0, %arg1 : i32, i32, i32, i32
  }
  func.func @transform_2(%arg0: i32, %arg1: i32) -> (i32, i32, i32, i32) {
    %c0_i32 = arith.constant 0 : i32
    %c0_i32_0 = arith.constant 0 : i32
    %c0_i32_1 = arith.constant 0 : i32
    return %arg0, %c0_i32, %c0_i32_0, %arg1 : i32, i32, i32, i32
  }
  func.func @transform_3(%arg0: i32, %arg1: i32) -> (i32, i32, i32, i32) {
    %c0_i32 = arith.constant 0 : i32
    %c0_i32_0 = arith.constant 0 : i32
    %c0_i32_1 = arith.constant 0 : i32
    return %arg0, %c0_i32, %c0_i32_0, %arg1 : i32, i32, i32, i32
  }
  func.func @transform_4(%arg0: i32, %arg1: i32) -> (i32, i32, i32, i32) {
    %c0_i32 = arith.constant 0 : i32
    %c0_i32_0 = arith.constant 0 : i32
    %c0_i32_1 = arith.constant 0 : i32
    return %arg0, %c0_i32, %c0_i32_0, %arg1 : i32, i32, i32, i32
  }
  func.func @transform_5(%arg0: i32, %arg1: i32) -> (i32, i32, i32, i32) {
    %c0_i32 = arith.constant 0 : i32
    %c0_i32_0 = arith.constant 0 : i32
    %c0_i32_1 = arith.constant 0 : i32
    return %arg0, %c0_i32, %c0_i32_0, %arg1 : i32, i32, i32, i32
  }
}

</mosaic_0001>

<bundles_post_ra>
// kernel: tpu_custom_call.1
= control target key start
LH: loop header
LB: loop body
LE: loop exit
PB: predicated region body
PF: predicated region fallthrough
CT: control target
= control target key end

     0   :  { %s1992_s0 = inlined_call_operand.hbm [shape: f32[4,4,2,128], index: 0, kind: input, shape index: {}]   ;;  %s1993_s1 = inlined_call_operand.hbm [shape: f32[4,4,2,128], index: 1, kind: input, shape index: {}]   ;;  %s1994_s2 = inlined_call_operand.hbm [shape: f32[4,4,4,128], index: 2, kind: input, shape index: {}]   ;;  %s1995_s3 = inlined_call_operand.hbm [shape: f32[4,4,4,128], index: 3, kind: input, shape index: {}]   ;;  %s1996_s4 = inlined_call_operand.hbm [shape: f32[4,2,4,128], index: 4, kind: output, shape index: {0}]   ;;  %s1997_s5 = inlined_call_operand.hbm [shape: f32[4,2,4,128], index: 5, kind: output, shape index: {1}]  }
   0x1   :  { %2002 = sst [smem:[#allocation23_spill]] %s1992_s0 }
   0x2   :  { %2003 = sst [smem:[#allocation24_spill]] %s1993_s1 }
   0x3   :  { %11 = vsyncpa [#allocation3], 0 }
   0x4   :  { %13 = vsyncpa [#allocation3 + $0x1], 0 }
   0x5   :  { %14 = vsyncpa [#allocation6], 0 }
   0x6   :  { %16 = vsyncpa [#allocation6 + $0x1], 0 }
   0x7   :  { %17 = vsyncpa [#allocation9], 0 }
   0x8   :  { %19 = vsyncpa [#allocation9 + $0x1], 0 }
   0x9   :  { %20 = vsyncpa [#allocation4], 0 }
   0xa   :  { %22 = vsyncpa [#allocation4 + $0x1], 0 }
   0xb   :  { %23 = vsyncpa [#allocation12], 0 }
   0xc   :  { %25 = vsyncpa [#allocation12 + $0x1], 0  ;;  %s1540_s18 = smov 0   ;;  %s1542_s19 = smov 0  }
   0xd   :  { %s1544_s20 = smov 0   ;;  %s1546_s21 = smov 0  }
   0xe   :  { %s1548_s22 = smov 0   ;;  %s1550_s23 = smov 0  }
   0xf LB: > { %2004 = sst [smem:[#allocation18_spill]] %s1475_s18  ;;  %s1571_s24 = sadd.s32 4294967295, %s1495_s23   ;;  %s1495_s23 = sphi %s1550_s23, %s31_s23   ;;  %s1491_s22 = sphi %s1548_s22, %s2025_s22   ;;  %s1487_s21 = sphi %s1546_s21, %s2024_s21   ;;  %s1483_s20 = sphi %s1544_s20, %s2020_s20   ;;  %s1479_s19 = sphi %s1542_s19, %s2023_s19   ;;  %s1475_s18 = sphi %s1540_s18, %s2022_s18  }
  0x10   : > { %2005 = sst [smem:[#allocation19_spill]] %s1483_s20  ;;  %s1128_s25 = sadd.s32 4294967294, %s1495_s23  }
  0x11   : > { %s43_s26 = sadd.s32 1, %s1491_s22  ;;  %s52_s27 = sadd.s32 1, %s1483_s20 }
  0x12   : > { %p45_p0 = scmp.ge.s32.totalorder %s43_s26, 4  ;;  %p59_p1 = scmp.ne.s32.totalorder %s1483_s20, %s1479_s19 }
  0x13   : > { %p60_p2 = scmp.eq.s32.totalorder %s1495_s23, 0  ;;  %p65_p3 = scmp.ne.s32.totalorder %s1479_s19, %s1475_s18 }
  0x14   : > { %s2027_s26 = smov (%p45_p0, %s43_s26), 0  ;;  %p66_p5 = scmp.eq.s32.totalorder %s1571_s24, 0 }
  0x15   : > { %2006 = sst [smem:[#allocation20_spill]] %s2027_s26  ;;  %p1583_p4 = por %p60_p2, %p59_p1 }
  0x16   : > { %s47_s29 = ssub.s32 %s1491_s22, %s2027_s26  ;;  %p175_p6 = scmp.eq.s32.totalorder %s1571_s24, 3 }
  0x17   : > { %p50_p7 = scmp.eq.s32.totalorder %s47_s29, 0  ;;  %p1591_p8 = por %p66_p5, %p65_p3 }
  0x18   : > { %p1595_p9 = por %p175_p6, %p59_p1  ;;  %p181_p10 = scmp.eq.s32.totalorder %s1128_s25, 3 }
  0x19   : > { %s1600_s7 = scalar_select %p50_p7, %s1483_s20, %s52_s27  }
  0x1a   : > { %p1602_p11 = por %p181_p10, %p65_p3  ;;  %p1208_p12 = scmp.lt.s32.totalorder %s1495_s23, 4 }
  0x1b   : > { %2010 = sst [smem:[#allocation21_spill]] %s1600_s7  ;;  %s1608_s9 = sand.u32 1, %s1483_s20  }
  0x1c   : > { %s2011_s8 = scalar_select %p1602_p11, 1, 0 }
  0x1d   : > { %s1131_s10 = sshll.u32 %s1608_s9, 3  ;;  %s1170_s11 = sshll.u32 %s1491_s22, 7 }
  0x1e   : > { %2012 = sst [smem:[#allocation22_spill]] %s2011_s8  ;;  %p1614_p13 = pnand %p1208_p12, %p1583_p4 }
  0x1f   : > { %s251_s13 = sand.u32 1, %s1495_s23   ;;  %s2014_s1 = sld [smem:[#allocation24_spill]] }
  0x20   : > { %s255_s17 = scalar_lea.vmem [#allocation5], %s1131_s10  ;;  %p1143_p0 = scmp.ge.s32.totalorder %s1495_s23, 1 }
  0x21   : > { %s263_s25 = sshll.u32 %s255_s17, 4  ;;  %p315_p1 = scmp.lt.s32.totalorder %s1495_s23, 5  ;;  %s264_s25 = int_to_ptr.vmem [resolvable:$true] %s263_s25 }
  0x22   : > { %s1628_s27 = scalar_lea.sflag [#allocation6], %s251_s13  ;;  %p1267_p2 = pneg %p1614_p13 }
  0x23   : > { %s1278_s28 = scalar_lea.vmem %s264_s25, 128  ;;  %s1497_s29 = smov [#allocation5]  }
  0x24   : > { %p1279_p3 = scmp.ne.s32.totalorder %s264_s25, %s1278_s28  ;;  %s1283_s26 = sshll.u32 %s1497_s29, 4  ;;  %s1284_s26 = int_to_ptr.vmem [resolvable:$false] %s1283_s26 }
  0x25   : > { %s262_s16 = scalar_lea.hbm %s2014_s1, %s1170_s11  ;;  %s1285_s14 = scalar_lea.vmem %s1284_s26, 256 }
  0x26   : > { %p1281_p4 = pnand %p1279_p3, %p1267_p2  ;;  %p1286_p6 = scmp.lt.s32.totalorder %s264_s25, %s1284_s26 }
  0x27   : > { %p1287_p7 = scmp.lt.s32.totalorder %s1285_s14, %s1278_s28 }
  0x28   : > { %p1282_p5 = pneg %p1281_p4 }
  0x29   : > { %p1288_p10 = por %p1287_p7, %p1286_p6 }
  0x2b   : > { %p1289_p12 = pnand %p1288_p10, %p1282_p5 }
  0x2d   : > { %1292 = shalt.err (!%p1289_p12)
}
  0x2e   : > { %s1498_s15 = smov 32   ;;  %s1499_s13 = smov 2  }
  0x2f   : > { %1194 = dma.hbm_to_vmem [thread:$0]  (!%p1614_p13), %s262_s16, 128, %s264_s25, %s1628_s27, %s1498_s15, %s1498_s15, %s1499_s13  }
  0x30   : > { %p1642_p3 = pnand %p1143_p0, %p315_p1  ;;  %s2016_s0 = sld [smem:[#allocation23_spill]] }
  0x31   : > { %s233_s14 = scalar_lea.vmem [#allocation2], %s1131_s10  ;;  %s1137_s7 = sshll.u32 %s1608_s9, 4 }
  0x32   : > { %s241_s1 = sshll.u32 %s233_s14, 4  ;;  %s230_s20 = scalar_lea.sflag [#allocation3], %s1608_s9  ;;  %s242_s1 = int_to_ptr.vmem [resolvable:$true] %s241_s1 }
  0x33   : > { %s1306_s8 = scalar_lea.vmem %s242_s1, 128  ;;  %s1500_s16 = smov [#allocation2]  }
  0x34   : > { %p1307_p4 = scmp.ne.s32.totalorder %s242_s1, %s1306_s8  ;;  %s1311_s25 = sshll.u32 %s1500_s16, 4  ;;  %s1312_s25 = int_to_ptr.vmem [resolvable:$false] %s1311_s25 }
  0x35   : > { %s1313_s18 = scalar_lea.vmem %s1312_s25, 256  ;;  %p1314_p1 = scmp.lt.s32.totalorder %s242_s1, %s1312_s25 }
  0x36   : > { %s240_s29 = scalar_lea.hbm %s2016_s0, %s1170_s11  ;;  %p1309_p5 = pnand %p1307_p4, %p1267_p2 }
  0x37   : > { %p1315_p6 = scmp.lt.s32.totalorder %s1313_s18, %s1306_s8 }
  0x38   : > { %p1310_p0 = pneg %p1309_p5 }
  0x39   : > { %p1316_p7 = por %p1315_p6, %p1314_p1 }
  0x3b   : > { %p1317_p10 = pnand %p1316_p7, %p1310_p0 }
  0x3d   : > { %1320 = shalt.err (!%p1317_p10)
}
  0x3e   : > { %1191 = dma.hbm_to_vmem [thread:$0]  (!%p1614_p13), %s240_s29, 128, %s242_s1, %s230_s20, %s1498_s15, %s1498_s15, %s1499_s13  }
  0x3f   : > { %s1172_s10 = sshll.u32 %s1491_s22, 8  ;;  %s277_s11 = scalar_lea.vmem [#allocation7], %s1137_s7 }
  0x40   : > { %s285_s17 = sshll.u32 %s277_s11, 4  ;;  %s284_s16 = scalar_lea.hbm %s1994_s2, %s1172_s10  ;;  %s286_s17 = int_to_ptr.vmem [resolvable:$true] %s285_s17 }
  0x41   : > { %s1334_s25 = scalar_lea.vmem %s286_s17, 256  ;;  %s1501_s18 = smov [#allocation7]  }
  0x42   : > { %p1335_p12 = scmp.ne.s32.totalorder %s286_s17, %s1334_s25  ;;  %s1339_s8 = sshll.u32 %s1501_s18, 4  ;;  %s1340_s8 = int_to_ptr.vmem [resolvable:$false] %s1339_s8 }
  0x43   : > { %s1341_s0 = scalar_lea.vmem %s1340_s8, 512  ;;  %p1342_p0 = scmp.lt.s32.totalorder %s286_s17, %s1340_s8 }
  0x44   : > { %p1337_p4 = pnand %p1335_p12, %p1267_p2  ;;  %p1343_p1 = scmp.lt.s32.totalorder %s1341_s0, %s1334_s25 }
  0x46   : > { %p1338_p5 = pneg %p1337_p4  ;;  %p1344_p6 = por %p1343_p1, %p1342_p0 }
  0x48   : > { %p1345_p7 = pnand %p1344_p6, %p1338_p5 }
  0x4a   : > { %1348 = shalt.err (!%p1345_p7)
}
  0x4b   : > { %s1502_s1 = smov 64   ;;  %s1503_s20 = smov 4  }
  0x4c   : > { %1197 = dma.hbm_to_vmem [thread:$0]  (!%p1614_p13), %s284_s16, 256, %s286_s17, %s1628_s27, %s1502_s1, %s1502_s1, %s1503_s20  }
  0x4d   : > { %s306_s29 = scalar_lea.hbm %s1995_s3, %s1172_s10  ;;  %s299_s11 = scalar_lea.vmem [#allocation8], %s1137_s7 }
  0x4e   : > { %s307_s28 = sshll.u32 %s299_s11, 4  ;;  %s296_s0 = scalar_lea.sflag [#allocation9], %s1608_s9  ;;  %s308_s28 = int_to_ptr.vmem [resolvable:$true] %s307_s28 }
  0x4f   : > { %s1362_s14 = scalar_lea.vmem %s308_s28, 256  ;;  %s1504_s25 = smov [#allocation8]  }
  0x50   : > { %p1363_p10 = scmp.ne.s32.totalorder %s308_s28, %s1362_s14  ;;  %s1367_s18 = sshll.u32 %s1504_s25, 4  ;;  %s1368_s18 = int_to_ptr.vmem [resolvable:$false] %s1367_s18 }
  0x51   : > { %s1369_s8 = scalar_lea.vmem %s1368_s18, 512  ;;  %p1370_p5 = scmp.lt.s32.totalorder %s308_s28, %s1368_s18 }
  0x52   : > { %p1365_p12 = pnand %p1363_p10, %p1267_p2  ;;  %p1371_p0 = scmp.lt.s32.totalorder %s1369_s8, %s1362_s14 }
  0x54   : > { %p1366_p4 = pneg %p1365_p12  ;;  %p1372_p1 = por %p1371_p0, %p1370_p5 }
  0x56   : > { %p1373_p6 = pnand %p1372_p1, %p1366_p4 }
  0x58   : > { %1376 = shalt.err (!%p1373_p6)
}
  0x59   : > { %1200 = dma.hbm_to_vmem [thread:$0]  (!%p1614_p13), %s306_s29, 256, %s308_s28, %s296_s0, %s1502_s1, %s1502_s1, %s1503_s20  }
  0x5a   : > { %319 = sbr.rel (%p1642_p3) target bundleno = 174 (0xae), region = 36  ;;  %s1686_s7 = sand.u32 (!%p1642_p3), 1, %s1479_s19  }
  0x5b   : > { %s1689_s9 = sshll.u32 (!%p1642_p3), %s1686_s7, 3  ;;  %s322_s27 = scalar_lea.sflag (!%p1642_p3), [#allocation3], %s1686_s7 }
  0x5c   : > { %s1693_s10 = scalar_lea.vmem (!%p1642_p3), [#allocation2], %s1689_s9 }
  0x5f   : > { %1454 = dma.done.wait (%p1591_p8), %s322_s27, 128  }
  0x60   : > { %1456 = vsyncadd (%p1591_p8), %s322_s27, 4294967168  ;;  %s330_s12 = sand.u32 1, %s1571_s24   ;;  %s1701_s17 = scalar_lea.vmem [#allocation5], %s1689_s9 }
  0x61   : > { %s331_s26 = scalar_lea.sflag [#allocation6], %s330_s12 }
  0x62   : > { %1458 = dma.done.wait (%p1591_p8), %s331_s26, 384  }
  0x63   : > { %1460 = vsyncadd (%p1591_p8), %s331_s26, 4294966912  ;;  %s1146_s16 = sshll.u32 %s1686_s7, 4  ;;  %s349_s20 = scalar_lea.sflag [#allocation9], %s1686_s7 }
  0x64   : > { %s1708_s1 = scalar_lea.vmem [#allocation7], %s1146_s16  ;;  %s1711_s15 = scalar_lea.vmem [#allocation8], %s1146_s16 }
  0x65   : > { %1462 = dma.done.wait (%p1591_p8), %s349_s20, 256  }
  0x66   : > { %1464 = vsyncadd (%p1591_p8), %s349_s20, 4294967040  ;;  %v409_v0 = vlaneseq  ;;  %v1505_v1 = vmov 1966171168   ;;  %v399_v7 = vld [vmem:[%s1693_s10] sm:$0x3]  ;;  %s1825_s24 = scalar_lea.vmem [#allocation10], %s1689_s9 }
  0x67   : > { %v407_v2 = vunpack.c.l.s4 %v1505_v1  ;;  %v400_v8 = vld [vmem:[%s1701_s17] sm:$0x3]  ;;  %v401_v9 = vld [vmem:[%s1708_s1] sm:$0xf]  ;;  %v1151_v15 = vld [vmem:[%s1701_s17 + $0x2] sm:$0x3] }
  0x68   : > { %v410_v3 = vshrl.u32 %v409_v0, 7  ;;  %v1725_v10 = vld [vmem:[%s1711_s15] sm:$0xf]  ;;  %v1727_v11 = vadd.f32 %v400_v8, %v399_v7  ;;  %v1154_v19 = vld [vmem:[%s1693_s10 + $0x4] sm:$0x3]  ;;  %s919_s30 = sshll.u32 %s1825_s24, 4  ;;  %s1861_s30 = int_to_ptr.vmem [resolvable:$true] %s919_s30 }
  0x69   : > { %v408_v4 = vunpack.c.0.s8 %v407_v2  ;;  %v1150_v14 = vld [vmem:[%s1693_s10 + $0x2] sm:$0x3]  ;;  %v1739_v20 = vadd.f32 %v1725_v10, %v401_v9  ;;  %v1155_v23 = vld [vmem:[%s1701_s17 + $0x4] sm:$0x3]  ;;  %v1158_v30 = vld [vmem:[%s1693_s10 + $0x6] sm:$0x3] }
  0x6a   : > { %v1719_v6 = vsub.s32 0, %v410_v3  ;;  %v1733_v16 = vadd.f32 %v1151_v15, %v1150_v14  ;;  %v1747_v28 = vadd.f32 %v1155_v23, %v1154_v19  ;;  %v1159_v31 = vld [vmem:[%s1701_s17 + $0x6] sm:$0x3]  ;;  %v1152_v42 = vld [vmem:[%s1708_s1 + $0x4] sm:$0xf]  ;;  %s1174_s13 = sshll.u32 %s1487_s21, 7 }
  0x6b   : > { %v1717_v5 = vsub.s32 %v408_v4, %v410_v3  ;;  %v1755_v35 = vadd.f32 %v1159_v31, %v1158_v30  ;;  %v1153_v43 = vld [vmem:[%s1711_s15 + $0x4] sm:$0xf]  ;;  %v1156_v48 = vld [vmem:[%s1708_s1 + $0x8] sm:$0xf]  ;;  %v1160_v60 = vld [vmem:[%s1708_s1 + $0xc] sm:$0xf]  ;;  %s1875_s28 = scalar_lea.hbm %s1996_s4, %s1174_s13 }
  0x6c   : > { %v1157_v52 = vld [vmem:[%s1711_s15 + $0x8] sm:$0xf]  ;;  %v1161_v3 = vld [vmem:[%s1711_s15 + $0xc] sm:$0xf]  ;;  %s900_s0 = scalar_lea.sflag [#allocation4], %s1686_s7  ;;  %s1377_s14 = scalar_lea.vmem %s1861_s30, 128 }
  0x6d   : > { %v412_v12 = vrot.slane %v399_v7, %v1717_v5  ;;  %v447_v13 = vrot.slane %v400_v8, %v1717_v5  ;;  %v537_v17 = vrot.slane %v1150_v14, %v1717_v5  ;;  %v572_v18 = vrot.slane %v1151_v15, %v1717_v5  ;;  %p1378_p8 = scmp.ne.s32.totalorder %s1861_s30, %s1377_s14  ;;  %s1506_s25 = smov [#allocation10]  }
  0x6e   : > { %v662_v24 = vrot.slane %v1154_v19, %v1717_v5  ;;  %v697_v29 = vrot.slane %v1155_v23, %v1717_v5  ;;  %v787_v39 = vrot.slane %v1158_v30, %v1717_v5  ;;  %v822_v45 = vrot.slane %v1159_v31, %v1717_v5  ;;  %s1381_s18 = sshll.u32 %s1506_s25, 4  ;;  %s1382_s18 = int_to_ptr.vmem [resolvable:$false] %s1381_s18 }
  0x6f   : > { %v420_v21 = vrot.slane %v412_v12, %v1717_v5  ;;  %v455_v22 = vrot.slane %v447_v13, %v1717_v5  ;;  %v413_v25 = vcombine.high %v412_v12, %v412_v12  ;;  %v545_v26 = vrot.slane %v537_v17, %v1717_v5  ;;  %p1379_p13 = pnand %p1378_p8, %p1595_p9  ;;  %s1383_s8 = scalar_lea.vmem %s1382_s18, 256 }
  0x70   : > { %v580_v27 = vrot.slane %v572_v18, %v1717_v5  ;;  %v670_v34 = vrot.slane %v662_v24, %v1717_v5  ;;  %v705_v38 = vrot.slane %v697_v29, %v1717_v5  ;;  %v795_v50 = vrot.slane %v787_v39, %v1717_v5  ;;  %p1384_p3 = scmp.lt.s32.totalorder %s1861_s30, %s1382_s18  ;;  %p1385_p7 = scmp.lt.s32.totalorder %s1383_s8, %s1377_s14 }
  0x71   : > { %v431_v32 = vrot.slane %v420_v21, %v1719_v6  ;;  %v466_v33 = vrot.slane %v455_v22, %v1719_v6  ;;  %v556_v36 = vrot.slane %v545_v26, %v1719_v6  ;;  %v830_v54 = vrot.slane %v822_v45, %v1717_v5  ;;  %p1380_p2 = pneg %p1379_p13 }
  0x72   : > { %v591_v37 = vrot.slane %v580_v27, %v1719_v6  ;;  %v681_v44 = vrot.slane %v670_v34, %v1719_v6  ;;  %v716_v49 = vrot.slane %v705_v38, %v1719_v6  ;;  %v427_v55 = vrot.slane %v413_v25, %v1717_v5  ;;  %p1386_p10 = por %p1385_p7, %p1384_p3 }
  0x73   : > { %v1761_v40 = vmul.f32 %v431_v32, %v401_v9  ;;  %v1764_v41 = vmul.f32 %v466_v33, %v1725_v10  ;;  %v1770_v46 = vmul.f32 %v1152_v42, %v556_v36  ;;  %v806_v58 = vrot.slane %v795_v50, %v1719_v6 }
  0x74   : > { %v1772_v47 = vmul.f32 %v1153_v43, %v591_v37  ;;  %v1780_v53 = vmul.f32 %v1156_v48, %v681_v44  ;;  %v1786_v57 = vmul.f32 %v1157_v52, %v716_v49  ;;  %v448_v59 = vcombine.high %v447_v13, %v447_v13  ;;  %p1387_p12 = pnand %p1386_p10, %p1380_p2 }
  0x75   : > { %v510_v51 = vsub.f32 %v1761_v40, %v1764_v41  ;;  %v841_v61 = vrot.slane %v830_v54, %v1719_v6  ;;  %v435_v62 = vrot.slane %v427_v55, %v1719_v6  ;;  %v538_v63 = vcombine.high %v537_v17, %v537_v17 }
  0x76   : > { %v635_v56 = vsub.f32 %v1770_v46, %v1772_v47  ;;  %v573_v0 = vcombine.high %v572_v18, %v572_v18  ;;  %v760_v2 = vsub.f32 %v1780_v53, %v1786_v57  ;;  %v1795_v4 = vmul.f32 %v1160_v60, %v806_v58 }
  0x77   : > { %v462_v7 = vrot.slane %v448_v59, %v1717_v5  ;;  %v1798_v8 = vmul.f32 %v1161_v3, %v841_v61  ;;  %v1800_v12 = vmul.f32 %v435_v62, %v401_v9  ;;  %v552_v13 = vrot.slane %v538_v63, %v1717_v5 }
  0x78   : > { %v637_v1 = vadd.f32 %v635_v56, %v510_v51  ;;  %v587_v14 = vrot.slane %v573_v0, %v1717_v5  ;;  %v663_v18 = vcombine.high %v662_v24, %v662_v24  ;;  %v698_v19 = vcombine.high %v697_v29, %v697_v29 }
  0x79   : > { %v470_v17 = vrot.slane %v462_v7, %v1719_v6  ;;  %v885_v21 = vsub.f32 %v1795_v4, %v1798_v8  ;;  %v560_v22 = vrot.slane %v552_v13, %v1719_v6  ;;  %v788_v25 = vcombine.high %v787_v39, %v787_v39 }
  0x7a   : > { %v762_v15 = vadd.f32 %v760_v2, %v637_v1  ;;  %v595_v23 = vrot.slane %v587_v14, %v1719_v6  ;;  %v677_v26 = vrot.slane %v663_v18, %v1717_v5  ;;  %v712_v27 = vrot.slane %v698_v19, %v1717_v5 }
  0x7b   : > { %v1810_v9 = vmul.f32 %v470_v17, %v1725_v10  ;;  %v823_v30 = vcombine.high %v822_v45, %v822_v45  ;;  %v1814_v24 = vmul.f32 %v1152_v42, %v560_v22  ;;  %v802_v32 = vrot.slane %v788_v25, %v1717_v5 }
  0x7c   : > { %v887_v31 = vadd.f32 %v885_v21, %v762_v15  ;;  %v1816_v29 = vmul.f32 %v1153_v43, %v595_v23  ;;  %v685_v34 = vrot.slane %v677_v26, %v1719_v6  ;;  %v720_v10 = vrot.slane %v712_v27, %v1719_v6 }
  0x7d   : > { %v511_v33 = vsub.f32 %v1800_v12, %v1810_v9  ;;  %v837_v36 = vrot.slane %v823_v30, %v1717_v5  ;;  %v810_v38 = vrot.slane %v802_v32, %v1719_v6  ;;  %v482_v39 = vrot.slane %v1727_v11, %v1717_v5 }
  0x7e   : > { %895 = vst [vmem:[%s1825_s24] sm:$0xf] %v887_v31  ;;  %v636_v37 = vsub.f32 %v1814_v24, %v1816_v29  ;;  %v1833_v44 = vadd.f32 %v1153_v43, %v1152_v42  ;;  %v1835_v45 = vmul.f32 %v1156_v48, %v685_v34  ;;  %v1837_v49 = vmul.f32 %v1157_v52, %v720_v10 }
  0x7f   : > { %v845_v50 = vrot.slane %v837_v36, %v1719_v6  ;;  %v607_v51 = vrot.slane %v1733_v16, %v1717_v5  ;;  %v1843_v55 = vmul.f32 %v1160_v60, %v810_v38  ;;  %v490_v56 = vrot.slane %v482_v39, %v1717_v5 }
  0x80   : > { %v638_v54 = vadd.f32 %v636_v37, %v511_v33  ;;  %v1846_v58 = vadd.f32 %v1157_v52, %v1156_v48  ;;  %v761_v11 = vsub.f32 %v1835_v45, %v1837_v49  ;;  %v732_v59 = vrot.slane %v1747_v28, %v1717_v5 }
  0x81   : > { %v1850_v42 = vmul.f32 %v1161_v3, %v845_v50  ;;  %v615_v43 = vrot.slane %v607_v51, %v1717_v5  ;;  %v501_v16 = vrot.slane %v490_v56, %v1719_v6  ;;  %v1857_v61 = vadd.f32 %v1161_v3, %v1160_v60 }
  0x82   : > { %v857_v48 = vrot.slane %v1755_v35, %v1717_v5  ;;  %v483_v52 = vcombine.high %v482_v39, %v482_v39  ;;  %v763_v62 = vadd.f32 %v761_v11, %v638_v54  ;;  %v740_v28 = vrot.slane %v732_v59, %v1717_v5 }
  0x83   : > { %v886_v63 = vsub.f32 %v1843_v55, %v1850_v42  ;;  %v626_v0 = vrot.slane %v615_v43, %v1719_v6  ;;  %v508_v1 = vmul.f32 %v501_v16, %v1739_v20  ;;  %v608_v3 = vcombine.high %v607_v51, %v607_v51 }
  0x84   : > { %v865_v60 = vrot.slane %v857_v48, %v1717_v5  ;;  %v497_v2 = vrot.slane %v483_v52, %v1717_v5  ;;  %v751_v13 = vrot.slane %v740_v28, %v1719_v6  ;;  %v733_v14 = vcombine.high %v732_v59, %v732_v59 }
  0x85   : > { %v888_v35 = vadd.f32 %v886_v63, %v763_v62  ;;  %v633_v7 = vmul.f32 %v626_v0, %v1833_v44  ;;  %v514_v15 = vsub.f32 %v508_v1, %v1761_v40  ;;  %v622_v19 = vrot.slane %v608_v3, %v1717_v5 }
  0x86   : > { %v876_v17 = vrot.slane %v865_v60, %v1719_v6  ;;  %v505_v18 = vrot.slane %v497_v2, %v1719_v6  ;;  %v758_v22 = vmul.f32 %v751_v13, %v1846_v58  ;;  %v747_v23 = vrot.slane %v733_v14, %v1717_v5 }
  0x87   : > { %896 = vst [vmem:[%s1825_s24 + $0x4] sm:$0xf] %v888_v35  ;;  %v639_v21 = vsub.f32 %v633_v7, %v1770_v46  ;;  %v858_v25 = vcombine.high %v857_v48, %v857_v48  ;;  %v516_v26 = vsub.f32 %v514_v15, %v1764_v41  ;;  %v630_v30 = vrot.slane %v622_v19, %v1719_v6 }
  0x88   : > { %v883_v40 = vmul.f32 %v876_v17, %v1857_v61  ;;  %v509_v27 = vmul.f32 %v505_v18, %v1739_v20 }
  0x89   : > { %1390 = shalt.err (!%p1387_p12)
}
  0x8a   : > { %s1391_s27 = scalar_lea.hbm %s1875_s28, 128  ;;  %s1395_s26 = scalar_lea.hbm %s1996_s4, 512 }
  0x8b   : > { %p1392_p4 = scmp.ne.s32.totalorder %s1875_s28, %s1391_s27  ;;  %p1396_p1 = scmp.lt.s32.totalorder %s1875_s28, %s1996_s4 }
  0x8c   : > { %p1397_p6 = scmp.lt.s32.totalorder %s1395_s26, %s1391_s27 }
  0x8d   : > { %p1393_p5 = pnand %p1392_p4, %p1595_p9 }
  0x8e   : > { %p1398_p8 = por %p1397_p6, %p1396_p1 }
  0x8f   : > { %p1394_p0 = pneg %p1393_p5 }
  0x91   : > { %p1399_p13 = pnand %p1398_p8, %p1394_p0 }
  0x93   : > { %1402 = shalt.err (!%p1399_p13)
}
  0x94   : > { %s1507_s1 = smov 64   ;;  %s1508_s20 = smov 4   ;;  %v641_v20 = vsub.f32 %v639_v21, %v1772_v47  ;;  %v764_v41 = vsub.f32 %v758_v22, %v1780_v53  ;;  %v755_v46 = vrot.slane %v747_v23, %v1719_v6  ;;  %v872_v31 = vrot.slane %v858_v25, %v1717_v5 }
  0x95   : > { %1184 = dma.vmem_to_hbm [thread:$0]  (%p1595_p9), %s1861_s30, 128, %s1875_s28, %s900_s0, %s1507_s1, %s1507_s1, %s1508_s20   ;;  %v889_v32 = vsub.f32 %v883_v40, %v1795_v4  ;;  %v515_v33 = vsub.f32 %v509_v27, %v1800_v12  ;;  %v634_v34 = vmul.f32 %v630_v30, %v1833_v44 }
  0x96   : > { %v643_v10 = vadd.f32 %v641_v20, %v516_v26  ;;  %v766_v36 = vsub.f32 %v764_v41, %v1786_v57  ;;  %v759_v37 = vmul.f32 %v755_v46, %v1846_v58  ;;  %v880_v47 = vrot.slane %v872_v31, %v1719_v6  ;;  %s398_s15 = scalar_lea.vmem [#allocation11], %s1689_s9  ;;  %s1944_s11 = scalar_lea.hbm %s1997_s5, %s1174_s13 }
  0x97   : > { %v891_v53 = vsub.f32 %v889_v32, %v1798_v8  ;;  %v517_v38 = vsub.f32 %v515_v33, %v1810_v9  ;;  %v640_v5 = vsub.f32 %v634_v34, %v1814_v24  ;;  %s936_s24 = sshll.u32 %s398_s15, 4  ;;  %s905_s9 = scalar_lea.sflag [#allocation12], %s1686_s7  ;;  %s1937_s24 = int_to_ptr.vmem [resolvable:$true] %s936_s24 }
  0x98   : > { %v768_v4 = vadd.f32 %v766_v36, %v643_v10  ;;  %v765_v12 = vsub.f32 %v759_v37, %v1835_v45  ;;  %v884_v39 = vmul.f32 %v880_v47, %v1857_v61  ;;  %s1403_s28 = scalar_lea.vmem %s1937_s24, 128  ;;  %s1509_s0 = smov [#allocation11]  }
  0x99   : > { %v642_v44 = vsub.f32 %v640_v5, %v1816_v29  ;;  %p1404_p2 = scmp.ne.s32.totalorder %s1937_s24, %s1403_s28  ;;  %s1407_s14 = sshll.u32 %s1509_s0, 4  ;;  %s1408_s14 = int_to_ptr.vmem [resolvable:$false] %s1407_s14 }
  0x9a   : > { %v893_v57 = vadd.f32 %v891_v53, %v768_v4  ;;  %v767_v50 = vsub.f32 %v765_v12, %v1837_v49  ;;  %v890_v6 = vsub.f32 %v884_v39, %v1843_v55  ;;  %s1409_s25 = scalar_lea.vmem %s1408_s14, 256  ;;  %p1410_p10 = scmp.lt.s32.totalorder %s1937_s24, %s1408_s14 }
  0x9b   : > { %v644_v8 = vadd.f32 %v642_v44, %v517_v38  ;;  %p1405_p3 = pnand %p1404_p2, %p1595_p9  ;;  %p1411_p12 = scmp.lt.s32.totalorder %s1409_s25, %s1403_s28 }
  0x9c   : > { %897 = vst [vmem:[%s398_s15] sm:$0xf] %v893_v57  ;;  %v892_v9 = vsub.f32 %v890_v6, %v1850_v42 }
  0x9d   : > { %v769_v24 = vadd.f32 %v767_v50, %v644_v8  ;;  %p1406_p7 = pneg %p1405_p3  ;;  %p1412_p4 = por %p1411_p12, %p1410_p10 }
  0x9f   : > { %v894_v45 = vadd.f32 %v892_v9, %v769_v24  ;;  %p1413_p5 = pnand %p1412_p4, %p1406_p7 }
  0xa1   : > { %898 = vst [vmem:[%s398_s15 + $0x4] sm:$0xf] %v894_v45 }
  0xa2   : > { %1416 = shalt.err (!%p1413_p5)
}
  0xa3   : > { %s1417_s21 = scalar_lea.hbm %s1944_s11, 128  ;;  %s1421_s18 = scalar_lea.hbm %s1997_s5, 512 }
  0xa4   : > { %p1418_p0 = scmp.ne.s32.totalorder %s1944_s11, %s1417_s21  ;;  %p1422_p8 = scmp.lt.s32.totalorder %s1944_s11, %s1997_s5 }
  0xa5   : > { %p1423_p13 = scmp.lt.s32.totalorder %s1421_s18, %s1417_s21 }
  0xa6   : > { %p1419_p1 = pnand %p1418_p0, %p1595_p9 }
  0xa7   : > { %p1424_p2 = por %p1423_p13, %p1422_p8 }
  0xa8   : > { %p1420_p6 = pneg %p1419_p1 }
  0xaa   : > { %p1425_p3 = pnand %p1424_p2, %p1420_p6 }
  0xac   : > { %1428 = shalt.err (!%p1425_p3)
}
  0xad   : > { %1185 = dma.vmem_to_hbm [thread:$0]  (%p1595_p9), %s1937_s24, 128, %s1944_s11, %s905_s9, %s1507_s1, %s1507_s1, %s1508_s20  }
  0xae PF: > { %s2017_s10 = sld [smem:[#allocation18_spill]]  ;;  %p1209_p7 = scmp.ge.s32.totalorder %s1495_s23, 2 }
  0xb0   : > { %p1202_p10 = pnand %p1209_p7, %p1602_p11 }
  0xb2   : > { %p1203_p12 = pneg %p1202_p10 }
  0xb4   : > { %s951_s26 = sand.u32 1, %s2017_s10  }
  0xb5   : > { %s952_s17 = scalar_lea.sflag [#allocation4], %s951_s26 }
  0xb6   : > { %1466 = dma.done.wait (%p1203_p12), %s952_s17, 128  }
  0xb7   : > { %1468 = vsyncadd (%p1203_p12), %s952_s17, 4294967168  ;;  %s961_s16 = scalar_lea.sflag [#allocation12], %s951_s26 }
  0xb8   : > { %1470 = dma.done.wait (%p1203_p12), %s961_s16, 128  }
  0xb9   : > { %1472 = vsyncadd (%p1203_p12), %s961_s16, 4294967168  ;;  %s31_s23 = sadd.s32 1, %s1495_s23   ;;  %s2019_s6 = sld [smem:[#allocation19_spill]] }
  0xba   : > { %p28_p4 = scmp.ge.s32.totalorder %s31_s23, 6   ;;  %s2020_s20 = sld [smem:[#allocation21_spill]] }
  0xbb   : > { %s2021_s1 = sld [smem:[#allocation20_spill]]  ;;  %s2022_s18 = smov %s1479_s19 }
  0xbc   : > { %s2024_s21 = smov %s1491_s22 }
  0xbd   :  { %30 = sbr.rel (!%p28_p4) target bundleno = 15 (0xf), region = 147 }
  0xbf   : > { %s2023_s19 = smov %s2019_s6 }
  0xc1   : > { %s2025_s22 = smov %s2021_s1 }
  0xc2   :  { %966 = vsyncpa [#allocation3], 1 }
  0xc3   :  { %968 = vsyncpa [#allocation3 + $0x1], 1 }
  0xc4   :  { %969 = vsyncpa [#allocation6], 1 }
  0xc5   :  { %971 = vsyncpa [#allocation6 + $0x1], 1 }
  0xc6   :  { %972 = vsyncpa [#allocation9], 1 }
  0xc7   :  { %974 = vsyncpa [#allocation9 + $0x1], 1 }
  0xc8   :  { %975 = vsyncpa [#allocation4], 1 }
  0xc9   :  { %977 = vsyncpa [#allocation4 + $0x1], 1 }
  0xca   :  { %978 = vsyncpa [#allocation12], 1 }
  0xcb   :  { %980 = vsyncpa [#allocation12 + $0x1], 1 }

</bundles_post_ra>
